<compile_context>
chip_gen: v6e
topology: v6e:2x2x1
jax: 0.10.0
libtpu: 0.0.40
codegen_flags: <defaults>
</compile_context>

<pallas_src>
import math
import functools

import jax
import jax.numpy as jnp
from jax.experimental import pallas as pl
from jax.experimental.pallas import tpu as pltpu


def _feature_regression_kernel(x_ref, wm_ref, b_ref, o_ref):
    """o = x @ W_masked.T + b on one lane-dense batch tile.

    x_ref:  (TB, DP)   packed batch tile (DP = P*D, lane-dense)
    wm_ref: (DP, DP)   block-diagonal pre-masked weights (VMEM-resident)
    b_ref:  (1,  DP)   tiled bias, already f32 (VMEM-resident)
    o_ref:  (TB, DP)   output tile
    """
    # Contract x's dim 1 with W's dim 1  ==  x @ W.T, no transpose materialized.
    out = jax.lax.dot_general(
        x_ref[...],
        wm_ref[...],
        dimension_numbers=(((1,), (1,)), ((), ())),
        preferred_element_type=jnp.float32,
    )
    o_ref[...] = (out + b_ref[...]).astype(o_ref.dtype)


@functools.partial(jax.jit, static_argnames=("block_b",))
def feature_regression(x: jax.Array, W: jax.Array, b: jax.Array,
                       *, block_b: int = 16384) -> jax.Array:
    """Pallas wrapper. x: (B, D), W: (D, D), b: (D,) -> (B, D).

    block_b is the (unpacked) number of batch rows per grid step.
    """
    B, D = x.shape

    # ---- Hoisted prep (runs once per call, outside the hot grid loop) ----
    # Mask W exactly once: W * (1 - I).
    w_masked = W * (jnp.float32(1.0) - jnp.eye(D, dtype=W.dtype))

    # Lane-dense packing factor: fold P rows into the 128-lane dimension when
    # D is a small divisor of 128 (D=32 -> P=4, DP=128).
    if D < 128 and 128 % D == 0:
        P = 128 // D
    else:
        P = 1
    DP = D * P

    # Block-diagonal weights: out_packed = x_packed @ W_bd.T is exactly P
    # independent per-row regressions laid out along lanes.
    w_bd = jnp.kron(jnp.eye(P, dtype=W.dtype), w_masked)          # (DP, DP)
    b_row = jnp.tile(b.astype(jnp.float32), P).reshape(1, DP)     # (1, DP)

    # Pad batch so the relayout is a pure row-major reshape.
    B_pad = -(-B // P) * P
    xp = x if B_pad == B else jnp.pad(x, ((0, B_pad - B), (0, 0)))
    n = B_pad // P                                                # packed rows
    xp = xp.reshape(n, DP)

    # ---- Batch-tile selection ----
    # Big tiles to amortize per-grid-step overhead; multiple of 8 sublanes;
    # at least 2 grid steps when there is enough work (megacore on v7x).
    tb = max(1, min(block_b // P if P > 1 else block_b, n))
    if n >= 16:
        tb = min(tb, max(8, (((n + 1) // 2) // 8) * 8))
    if tb >= 8:
        tb = (tb // 8) * 8
        n_pad = -(-n // tb) * tb
    else:
        tb = n                      # tiny batch: single full-extent block
        n_pad = n
    if n_pad != n:
        xp = jnp.pad(xp, ((0, n_pad - n), (0, 0)))

    grid = (n_pad // tb,)

    # Explicit VMEM budget: double-buffered x + out tiles plus resident W/b,
    # with headroom; clamped so a v7x (64 MiB physical) never over-commits.
    itemsize = jnp.dtype(x.dtype).itemsize
    w_bytes = DP * DP * jnp.dtype(W.dtype).itemsize + DP * 4
    vmem_need = 2 * 2 * tb * DP * itemsize + 2 * w_bytes
    vmem_limit = int(min(max(vmem_need + (2 << 20), 16 << 20), 48 << 20))

    out = pl.pallas_call(
        _feature_regression_kernel,
        out_shape=jax.ShapeDtypeStruct((n_pad, DP), x.dtype),
        grid=grid,
        in_specs=[
            # x: streamed per batch tile (double-buffered by Pallas).
            pl.BlockSpec((tb, DP), lambda i: (i, 0),
                         memory_space=pltpu.MemorySpace.VMEM),
            # W_bd: same block every step -> stays VMEM-resident.
            pl.BlockSpec((DP, DP), lambda i: (0, 0),
                         memory_space=pltpu.MemorySpace.VMEM),
            # bias: same block every step -> stays VMEM-resident.
            pl.BlockSpec((1, DP), lambda i: (0, 0),
                         memory_space=pltpu.MemorySpace.VMEM),
        ],
        out_specs=pl.BlockSpec((tb, DP), lambda i: (i, 0),
                               memory_space=pltpu.MemorySpace.VMEM),
        compiler_params=pltpu.CompilerParams(
            # Batch tiles are independent -> shard across TensorCores (v7x).
            dimension_semantics=("parallel",),
            vmem_limit_bytes=vmem_limit,
        ),
    )(xp, w_bd, b_row)

    # Undo the lane-dense packing (pure reshape) and drop padded rows.
    out = out.reshape(n_pad * P, D)
    if n_pad * P != B:
        out = out[:B]
    return out


if __name__ == "__main__":
    # Small deterministic setup consistent with the module:
    # input_size (feature dim) = 32, batch = 16.
    input_size = 32
    batch = 16

    key = jax.random.PRNGKey(0)
    k_x, k_w, k_b = jax.random.split(key, 3)

    std_dev = 1.0 / math.sqrt(input_size)
    W = jax.random.uniform(
        k_w, (input_size, input_size), jnp.float32, minval=-std_dev, maxval=std_dev
    )
    b = jax.random.uniform(
        k_b, (input_size,), jnp.float32, minval=-std_dev, maxval=std_dev
    )
    x = jax.random.normal(k_x, (batch, input_size), jnp.float32)

    out = feature_regression(x, W, b)
    out = jax.block_until_ready(out)

    # Pure-JAX reference check (x @ (W * (1 - I)).T + b).
    mask = jnp.ones((input_size, input_size)) - jnp.eye(input_size)
    ref = x @ (W * mask).T + b
    assert out.shape == (batch, input_size)
    assert jnp.allclose(out, ref, atol=1e-5, rtol=1e-5)

    print("KERNEL_OK")
</pallas_src>

<mosaic_0001>
module attributes {stable_mosaic.version = 11 : i64} {
  func.func @_feature_regression_kernel(%arg0: i32, %arg1: memref<4x128xf32, #tpu.memory_space<vmem>>, %arg2: memref<128x128xf32, #tpu.memory_space<vmem>>, %arg3: memref<1x128xf32, #tpu.memory_space<vmem>>, %arg4: memref<4x128xf32, #tpu.memory_space<vmem>>) attributes {dimension_semantics = [#tpu.dimension_semantics<parallel>], iteration_bounds = array<i64: 1>, scalar_prefetch = 0 : i64, scratch_operands = 0 : i64, tpu.core_type = #tpu.core_type<tc>, window_params = [{transform_indices = @transform_0, window_bounds = array<i64: 4, 128>}, {pipeline_mode = #tpu.pipeline_mode<synchronous>, transform_indices = @transform_1, window_bounds = array<i64: 128, 128>}, {pipeline_mode = #tpu.pipeline_mode<synchronous>, transform_indices = @transform_2, window_bounds = array<i64: 1, 128>}, {transform_indices = @transform_3, window_bounds = array<i64: 4, 128>}]} {
    %c0 = arith.constant 0 : index
    %c0_0 = arith.constant 0 : index
    %0 = vector.load %arg1[%c0, %c0_0] : memref<4x128xf32, #tpu.memory_space<vmem>>, vector<4x128xf32>
    %c0_1 = arith.constant 0 : index
    %c0_2 = arith.constant 0 : index
    %1 = vector.load %arg2[%c0_1, %c0_2] : memref<128x128xf32, #tpu.memory_space<vmem>>, vector<128x128xf32>
    %cst = arith.constant dense<0.000000e+00> : vector<4x128xf32>
    %2 = tpu.matmul %0, %1, %cst {dimension_numbers = #tpu.dot_dimension_numbers<[1], [1], [0], [0], [0, 0, 1, 0], [], []>} : vector<4x128xf32>, vector<128x128xf32>, vector<4x128xf32> -> vector<4x128xf32>
    %c0_3 = arith.constant 0 : index
    %c0_4 = arith.constant 0 : index
    %3 = vector.load %arg3[%c0_3, %c0_4] : memref<1x128xf32, #tpu.memory_space<vmem>>, vector<1x128xf32>
    %4 = vector.broadcast %3 : vector<1x128xf32> to vector<4x128xf32>
    %5 = arith.addf %2, %4 : vector<4x128xf32>
    %c0_5 = arith.constant 0 : index
    %c0_6 = arith.constant 0 : index
    %6 = vector.load %arg4[%c0_5, %c0_6] : memref<4x128xf32, #tpu.memory_space<vmem>>, vector<4x128xf32>
    tpu.vector_store %arg4[%c0_5, %c0_6], %5 {strides = array<i32>} : memref<4x128xf32, #tpu.memory_space<vmem>>, vector<4x128xf32>,
    return
  }
  func.func @transform_0(%arg0: i32) -> (i32, i32) {
    %c0_i32 = arith.constant 0 : i32
    %c0_i32_0 = arith.constant 0 : i32
    return %arg0, %c0_i32 : i32, i32
  }
  func.func @transform_1(%arg0: i32) -> (i32, i32) {
    %c0_i32 = arith.constant 0 : i32
    %c0_i32_0 = arith.constant 0 : i32
    %c0_i32_1 = arith.constant 0 : i32
    return %c0_i32, %c0_i32_0 : i32, i32
  }
  func.func @transform_2(%arg0: i32) -> (i32, i32) {
    %c0_i32 = arith.constant 0 : i32
    %c0_i32_0 = arith.constant 0 : i32
    %c0_i32_1 = arith.constant 0 : i32
    return %c0_i32, %c0_i32_0 : i32, i32
  }
  func.func @transform_3(%arg0: i32) -> (i32, i32) {
    %c0_i32 = arith.constant 0 : i32
    %c0_i32_0 = arith.constant 0 : i32
    return %arg0, %c0_i32 : i32, i32
  }
}

</mosaic_0001>

<bundles_post_ra>
// kernel: tile.8
= control target key start
LH: loop header
LB: loop body
LE: loop exit
PB: predicated region body
PF: predicated region fallthrough
CT: control target
= control target key end

     0   :  { %s22_s0 = inlined_call_operand.vmem [shape: f32[32], index: 0, kind: input, shape index: {}]   ;;  %s23_s1 = inlined_call_operand.vmem [shape: f32[4,32], index: 1, kind: output, shape index: {}]  }
   0x1   :  { %v4_v0 = vld [vmem:[%s22_s0] ss:$0 sm:$0xff] }
   0x2   :  { %5 = vst [vmem:[%s23_s1] sm:$0xf] %v4_v0 }

// kernel: tile.9
= control target key start
LH: loop header
LB: loop body
LE: loop exit
PB: predicated region body
PF: predicated region fallthrough
CT: control target
= control target key end

     0   :  { %vm8_vm0 = vcmask 261120   ;;  %s40_s8 = smov 32   ;;  %s41_s9 = smov 64   ;;  %vm14_vm1 = vcmask 1048320   ;;  %vm20_vm2 = vcmask 785920   ;;  %vm26_vm3 = vcmask 523520   ;;  %s58_s0 = inlined_call_operand.vmem [shape: f32[4,32], index: 0, kind: input, shape index: {}]   ;;  %s59_s1 = inlined_call_operand.vmem [shape: f32[1,128], index: 1, kind: output, shape index: {}]  }
   0x1   :  { %v5_v0 = vld [vmem:[%s58_s0] sm:$0xf]  ;;  %s39_s0 = smov 96  }
   0x2   :  { %6 = vst [vmem:[#allocation1] sm:$0xf] %v5_v0 }
   0x9   :  { %v11_v1 = vld [vmem:[#allocation1 + $0x3] sm:$0x1]   ;;  %v23_v2 = vld [vmem:[#allocation1 + $0x1] sm:$0x1]   ;;  %v7_v3 = vld [vmem:[#allocation1] sm:$0x1]  }
   0xa   :  { %12 = vrot.lane.b32.xlu0 %v11_v1, %s39_s0  ;;  %24 = vrot.lane.b32.xlu1 %v23_v2, %s40_s8  ;;  %v17_v4 = vld [vmem:[#allocation1 + $0x2] sm:$0x1]   ;;  %9 = vst.msk [vmem:[#allocation0] sm:$0x1] %vm8_vm0, %v7_v3  }
   0xe   :  { %18 = vrot.lane.b32.xlu0 %v17_v4, %s41_s9 }
  0x7c   :  { %v13_v5 = vpop.permute.xlu0 %12   ;;  %v25_v6 = vpop.permute.xlu1 %24  }
  0x7d   :  { %15 = vst.msk [vmem:[#allocation0] sm:$0x1] %vm14_vm1, %v13_v5  }
  0x80   :  { %v19_v7 = vpop.permute.xlu0 %18  }
  0x81   :  { %21 = vst.msk [vmem:[#allocation0] sm:$0x1] %vm20_vm2, %v19_v7  }
  0x82   :  { %27 = vst.msk [vmem:[#allocation0] sm:$0x1] %vm26_vm3, %v25_v6  }
  0x89   :  { %v32_v8 = vld [vmem:[#allocation0] sm:$0x1] }
  0x8a   :  { %35 = vst [vmem:[%s59_s1] sm:$0x1] %v32_v8 }

// kernel: feature_regression.1
= control target key start
LH: loop header
LB: loop body
LE: loop exit
PB: predicated region body
PF: predicated region fallthrough
CT: control target
= control target key end

     0   :  { %v168_v0 = vmov 0.0   ;;  %vm169_vm0 = vmmov 0   ;;  %s247_s1 = inlined_call_operand.vmem [shape: f32[128,128], index: 1, kind: input, shape index: {}]   ;;  %s248_s0 = inlined_call_operand.vmem [shape: f32[4,128], index: 0, kind: input, shape index: {}]   ;;  %s249_s2 = inlined_call_operand.vmem [shape: f32[1,128], index: 2, kind: input, shape index: {}]   ;;  %s250_s3 = inlined_call_operand.vmem [shape: f32[4,128], index: 3, kind: output, shape index: {}]  }
   0x1   :  { %131 = vmatprep.subr.mxu0 %v168_v0  ;;  %v30_v1 = vld [vmem:[%s247_s1 + $0x78] sm:$0xff]  ;;  %163 = vmatprep.mubr.msk.f32.mxu0 %vm169_vm0, %v168_v0  ;;  %v29_v2 = vld [vmem:[%s247_s1 + $0x70] sm:$0xff]  ;;  %v28_v3 = vld [vmem:[%s247_s1 + $0x68] sm:$0xff] }
   0x2   :  { %132 = vmatpush3.xpose.msra.mxu0 %v30_v1  ;;  %v27_v4 = vld [vmem:[%s247_s1 + $0x60] sm:$0xff]  ;;  %v26_v5 = vld [vmem:[%s247_s1 + $0x58] sm:$0xff]  ;;  %v25_v6 = vld [vmem:[%s247_s1 + $0x50] sm:$0xff] }
   0x3   :  { %133 = vmatprep.subr.mxu0 %v168_v0  ;;  %v24_v7 = vld [vmem:[%s247_s1 + $0x48] sm:$0xff]  ;;  %v23_v8 = vld [vmem:[%s247_s1 + $0x40] sm:$0xff]  ;;  %v22_v9 = vld [vmem:[%s247_s1 + $0x38] sm:$0xff] }
   0x4   :  { %v21_v10 = vld [vmem:[%s247_s1 + $0x30] sm:$0xff]  ;;  %v20_v11 = vld [vmem:[%s247_s1 + $0x28] sm:$0xff]  ;;  %v19_v12 = vld [vmem:[%s247_s1 + $0x20] sm:$0xff] }
   0x5   :  { %v18_v13 = vld [vmem:[%s247_s1 + $0x18] sm:$0xff]  ;;  %v17_v14 = vld [vmem:[%s247_s1 + $0x10] sm:$0xff]  ;;  %v16_v15 = vld [vmem:[%s247_s1 + $0x8] sm:$0xff] }
   0x6   :  { %134 = vmatpush3.xpose.msra.mxu0 %v29_v2  ;;  %v15_v16 = vld [vmem:[%s247_s1] sm:$0xff] }
   0x7   :  { %135 = vmatprep.subr.mxu0 %v168_v0  ;;  %v14_v17 = vld [vmem:[%s248_s0] sm:$0xf] }
   0x8   :  { %v113_v18 = vld [vmem:[%s249_s2] ss:$0 sm:$0xff] }
   0xa   :  { %136 = vmatpush3.xpose.msra.mxu0 %v28_v3 }
   0xb   :  { %137 = vmatprep.subr.mxu0 %v168_v0 }
   0xe   :  { %138 = vmatpush3.xpose.msra.mxu0 %v27_v4 }
   0xf   :  { %139 = vmatprep.subr.mxu0 %v168_v0 }
  0x12   :  { %140 = vmatpush3.xpose.msra.mxu0 %v26_v5 }
  0x13   :  { %141 = vmatprep.subr.mxu0 %v168_v0 }
  0x16   :  { %142 = vmatpush3.xpose.msra.mxu0 %v25_v6 }
  0x17   :  { %143 = vmatprep.subr.mxu0 %v168_v0 }
  0x1a   :  { %144 = vmatpush3.xpose.msra.mxu0 %v24_v7 }
  0x1b   :  { %145 = vmatprep.subr.mxu0 %v168_v0 }
  0x1e   :  { %146 = vmatpush3.xpose.msra.mxu0 %v23_v8 }
  0x1f   :  { %147 = vmatprep.subr.mxu0 %v168_v0 }
  0x22   :  { %148 = vmatpush3.xpose.msra.mxu0 %v22_v9 }
  0x23   :  { %149 = vmatprep.subr.mxu0 %v168_v0 }
  0x26   :  { %150 = vmatpush3.xpose.msra.mxu0 %v21_v10 }
  0x27   :  { %151 = vmatprep.subr.mxu0 %v168_v0 }
  0x2a   :  { %152 = vmatpush3.xpose.msra.mxu0 %v20_v11 }
  0x2b   :  { %153 = vmatprep.subr.mxu0 %v168_v0 }
  0x2e   :  { %154 = vmatpush3.xpose.msra.mxu0 %v19_v12 }
  0x2f   :  { %155 = vmatprep.subr.mxu0 %v168_v0 }
  0x32   :  { %156 = vmatpush3.xpose.msra.mxu0 %v18_v13 }
  0x33   :  { %157 = vmatprep.subr.mxu0 %v168_v0 }
  0x36   :  { %158 = vmatpush3.xpose.msra.mxu0 %v17_v14 }
  0x37   :  { %159 = vmatprep.subr.mxu0 %v168_v0 }
  0x3a   :  { %160 = vmatpush3.xpose.msra.mxu0 %v16_v15 }
  0x3b   :  { %161 = vmatprep.subr.mxu0 %v168_v0 }
  0x3e   :  { %162 = vmatpush3.xpose.msra.mxu0 %v15_v16 }
  0x41   :  { %164 = vmatmul.mubr.f32.vlgmr.msra.gmra.mxu0 %v14_v17 }
 0x101   :  { %v104_v19 = vpop.f32.mrf.mxu0 }
 0x102   :  { %v105_v20 = vadd.f32 %v113_v18, %v104_v19 }
 0x103   :  { %v165_v21 = vpop.f32.mrf.mxu0 }
 0x104   :  { %108 = vst [vmem:[%s250_s3] sm:$0xf] %v105_v20 }

</bundles_post_ra>
